<compile_context>
chip_gen: v7x
topology: tpu7x:2x2x1
jax: 0.10.0
libtpu: 0.0.40
codegen_flags: <defaults>
</compile_context>

<pallas_src>
import jax
import jax.numpy as jnp
from jax.experimental import pallas as pl
from jax.experimental.pallas import tpu as pltpu


INPUT_DIM = 12
HIDDEN = INPUT_DIM * INPUT_DIM   # 144
OUTPUT_DIM = 6
OUT_PAD = 8                      # padded final width (= out array's full last dim)


def _round_up(x, m):
    return (x + m - 1) // m * m


def _mlp_kernel(x_ref,
                w1_ref, b1_ref,
                w2_ref, b2_ref,
                w3_ref, b3_ref,
                w4_ref, b4_ref,
                o_ref):
    # x arrives f32 from HBM; single VPU cast to bf16 for the MXU.
    x = x_ref[...].astype(jnp.bfloat16)

    h = jnp.dot(x, w1_ref[...], preferred_element_type=jnp.float32) + b1_ref[...]
    h = jnp.maximum(h, 0.0)

    h = jnp.dot(h.astype(w2_ref.dtype), w2_ref[...],
                preferred_element_type=jnp.float32) + b2_ref[...]
    h = jnp.maximum(h, 0.0)

    h = jnp.dot(h.astype(w3_ref.dtype), w3_ref[...],
                preferred_element_type=jnp.float32) + b3_ref[...]
    h = jnp.maximum(h, 0.0)

    out = jnp.dot(h.astype(w4_ref.dtype), w4_ref[...],
                  preferred_element_type=jnp.float32) + b4_ref[...]
    # o_ref is (tb, 8) f32: tiny writeback, one vst per 8 rows.
    o_ref[...] = out.astype(o_ref.dtype)


def pack_params(params):
    """One-time packing: bf16 weights, f32 biases, fc4 zero-padded 6 -> OUT_PAD.

    Do this once and reuse across forward calls (avoids per-call cast/pad ops).
    """
    (w1, b1, w2, b2, w3, b3, w4, b4) = params
    w1b = w1.astype(jnp.bfloat16)
    w2b = w2.astype(jnp.bfloat16)
    w3b = w3.astype(jnp.bfloat16)
    w4p = jnp.zeros((HIDDEN, OUT_PAD), jnp.bfloat16).at[:, :OUTPUT_DIM].set(
        w4.astype(jnp.bfloat16))
    b1f = b1.reshape(1, -1).astype(jnp.float32)
    b2f = b2.reshape(1, -1).astype(jnp.float32)
    b3f = b3.reshape(1, -1).astype(jnp.float32)
    b4p = jnp.zeros((1, OUT_PAD), jnp.float32).at[:, :OUTPUT_DIM].set(
        b4.reshape(1, -1).astype(jnp.float32))
    packed = (w1b, b1f, w2b, b2f, w3b, b3f, w4p, b4p)
    return tuple(jax.device_put(p) for p in packed)


def net_forward(x, packed_params, *, block_b=2048):
    """x: (B, ...) flattened to (B, INPUT_DIM) like the PyTorch .view()."""
    batch = x.shape[0]
    x2d = x.reshape(batch, -1).astype(jnp.float32)
    assert x2d.shape[1] == INPUT_DIM, (
        f"expected flat dim {INPUT_DIM}, got {x2d.shape[1]}")

    (w1b, b1f, w2b, b2f, w3b, b3f, w4p, b4p) = packed_params

    # Batch tile: multiple of 8 (sublane).  Cap at ~half the batch so the
    # grid has >= 2 steps whenever possible -> both v7x TensorCores get work.
    half = _round_up(pl.cdiv(max(batch, 1), 2), 8)
    tb = max(8, min(_round_up(block_b, 8), half))
    grid = (pl.cdiv(batch, tb),)   # edge block (if any) is masked by Pallas

    const = lambda i: (0, 0)
    in_specs = [
        pl.BlockSpec((tb, INPUT_DIM), lambda i: (i, 0)),   # x tile (f32)
        pl.BlockSpec((INPUT_DIM, HIDDEN), const),          # w1 (VMEM-resident)
        pl.BlockSpec((1, HIDDEN), const),                  # b1
        pl.BlockSpec((HIDDEN, HIDDEN), const),             # w2
        pl.BlockSpec((1, HIDDEN), const),                  # b2
        pl.BlockSpec((HIDDEN, HIDDEN), const),             # w3
        pl.BlockSpec((1, HIDDEN), const),                  # b3
        pl.BlockSpec((HIDDEN, OUT_PAD), const),            # w4 (padded 6->8)
        pl.BlockSpec((1, OUT_PAD), const),                 # b4 (padded 6->8)
    ]
    out_spec = pl.BlockSpec((tb, OUT_PAD), lambda i: (i, 0))

    param_bytes = ((w1b.size + w2b.size + w3b.size + w4p.size) * 2 +
                   (b1f.size + b2f.size + b3f.size + b4p.size) * 4)
    flops = 2 * batch * (INPUT_DIM * HIDDEN + 2 * HIDDEN * HIDDEN
                         + HIDDEN * OUT_PAD)
    bytes_accessed = batch * (INPUT_DIM * 4 + OUT_PAD * 4) + param_bytes

    out_padded = pl.pallas_call(
        _mlp_kernel,
        out_shape=jax.ShapeDtypeStruct((batch, OUT_PAD), jnp.float32),
        grid=grid,
        in_specs=in_specs,
        out_specs=out_spec,
        compiler_params=pltpu.CompilerParams(
            dimension_semantics=("parallel",),
            vmem_limit_bytes=32 * 1024 * 1024),
        cost_estimate=pl.CostEstimate(
            flops=flops, transcendentals=0, bytes_accessed=bytes_accessed),
    )(x2d, w1b, b1f, w2b, b2f, w3b, b3f, w4p, b4p)

    return out_padded[:, :OUTPUT_DIM]


def init_params(key):
    """PyTorch-style init: U(-1/sqrt(fan_in), 1/sqrt(fan_in)).

    Weights are stored as (fan_in, fan_out) = PyTorch weight.T.
    Biases are stored as (1, fan_out).
    """
    sizes = [(INPUT_DIM, HIDDEN), (HIDDEN, HIDDEN),
             (HIDDEN, HIDDEN), (HIDDEN, OUTPUT_DIM)]
    params = []
    for (fan_in, fan_out) in sizes:
        key, kw, kb = jax.random.split(key, 3)
        bound = 1.0 / jnp.sqrt(fan_in)
        w = jax.random.uniform(kw, (fan_in, fan_out), jnp.float32, -bound, bound)
        b = jax.random.uniform(kb, (1, fan_out), jnp.float32, -bound, bound)
        params.extend([w, b])
    return tuple(params)


def net_forward_ref(x, params):
    """Pure-JAX reference with the same bf16-operand / f32-accum semantics."""
    x2d = x.reshape(x.shape[0], -1)
    (w1, b1, w2, b2, w3, b3, w4, b4) = params

    def lin(h, w, b):
        return jnp.dot(h.astype(jnp.bfloat16), w.astype(jnp.bfloat16),
                       preferred_element_type=jnp.float32) + b.astype(jnp.float32)

    h = jnp.maximum(lin(x2d, w1, b1), 0.0)
    h = jnp.maximum(lin(h, w2, b2), 0.0)
    h = jnp.maximum(lin(h, w3, b3), 0.0)
    return lin(h, w4, b4)


if __name__ == "__main__":
    key = jax.random.PRNGKey(0)
    key, kx = jax.random.split(key)
    params = init_params(key)
    packed = pack_params(params)   # one-time bf16 cast + padding

    # Small case: batch 2, single (masked) grid step.
    batch = 2
    x = jax.random.normal(kx, (batch, INPUT_DIM), jnp.float32)
    out = jax.block_until_ready(net_forward(x, packed))
    ref = net_forward_ref(x, params)
    assert out.shape == (batch, OUTPUT_DIM)
    assert jnp.allclose(out, ref, atol=2e-2, rtol=2e-2), "mismatch vs reference"

    # Non-divisible batch: grid >= 2 (megacore split on v7x) with a masked
    # edge block, no wrapper-side padding of x.
    batch2 = 300
    x2 = jax.random.normal(kx, (batch2, INPUT_DIM), jnp.float32)
    out2 = jax.block_until_ready(net_forward(x2, packed))
    ref2 = net_forward_ref(x2, params)
    assert out2.shape == (batch2, OUTPUT_DIM)
    assert jnp.allclose(out2, ref2, atol=2e-2, rtol=2e-2), "mismatch (grid=2)"

    # Explicit small tile to exercise a 3-step grid with an edge block.
    out3 = jax.block_until_ready(net_forward(x2, packed, block_b=128))
    assert jnp.allclose(out3, ref2, atol=2e-2, rtol=2e-2), "mismatch (tiled)"

    print("KERNEL_OK")
</pallas_src>

<mosaic_0001>
module attributes {stable_mosaic.version = 11 : i64} {
  func.func @_mlp_kernel(%arg0: i32, %arg1: memref<8x12xf32, #tpu.memory_space<vmem>>, %arg2: memref<12x144xbf16, #tpu.memory_space<vmem>>, %arg3: memref<1x144xf32, #tpu.memory_space<vmem>>, %arg4: memref<144x144xbf16, #tpu.memory_space<vmem>>, %arg5: memref<1x144xf32, #tpu.memory_space<vmem>>, %arg6: memref<144x144xbf16, #tpu.memory_space<vmem>>, %arg7: memref<1x144xf32, #tpu.memory_space<vmem>>, %arg8: memref<144x8xbf16, #tpu.memory_space<vmem>>, %arg9: memref<1x8xf32, #tpu.memory_space<vmem>>, %arg10: memref<8x8xf32, #tpu.memory_space<vmem>>) attributes {dimension_semantics = [#tpu.dimension_semantics<parallel>], iteration_bounds = array<i64: 1>, scalar_prefetch = 0 : i64, scratch_operands = 0 : i64, tpu.core_type = #tpu.core_type<tc>, window_params = [{transform_indices = @transform_0, window_bounds = array<i64: 8, 12>}, {pipeline_mode = #tpu.pipeline_mode<synchronous>, transform_indices = @transform_1, window_bounds = array<i64: 12, 144>}, {pipeline_mode = #tpu.pipeline_mode<synchronous>, transform_indices = @transform_2, window_bounds = array<i64: 1, 144>}, {pipeline_mode = #tpu.pipeline_mode<synchronous>, transform_indices = @transform_3, window_bounds = array<i64: 144, 144>}, {pipeline_mode = #tpu.pipeline_mode<synchronous>, transform_indices = @transform_4, window_bounds = array<i64: 1, 144>}, {pipeline_mode = #tpu.pipeline_mode<synchronous>, transform_indices = @transform_5, window_bounds = array<i64: 144, 144>}, {pipeline_mode = #tpu.pipeline_mode<synchronous>, transform_indices = @transform_6, window_bounds = array<i64: 1, 144>}, {pipeline_mode = #tpu.pipeline_mode<synchronous>, transform_indices = @transform_7, window_bounds = array<i64: 144, 8>}, {pipeline_mode = #tpu.pipeline_mode<synchronous>, transform_indices = @transform_8, window_bounds = array<i64: 1, 8>}, {transform_indices = @transform_9, window_bounds = array<i64: 8, 8>}]} {
    %c0 = arith.constant 0 : index
    %c0_0 = arith.constant 0 : index
    %0 = vector.load %arg1[%c0, %c0_0] : memref<8x12xf32, #tpu.memory_space<vmem>>, vector<8x12xf32>
    %1 = arith.truncf %0 : vector<8x12xf32> to vector<8x12xbf16>
    %c0_1 = arith.constant 0 : index
    %c0_2 = arith.constant 0 : index
    %2 = vector.load %arg2[%c0_1, %c0_2] : memref<12x144xbf16, #tpu.memory_space<vmem>>, vector<12x144xbf16>
    %cst = arith.constant dense<0.000000e+00> : vector<8x144xf32>
    %3 = tpu.matmul %1, %2, %cst {dimension_numbers = #tpu.dot_dimension_numbers<[1], [0], [0], [1], [0, 0, 1, 1], [], []>} : vector<8x12xbf16>, vector<12x144xbf16>, vector<8x144xf32> -> vector<8x144xf32>
    %c0_3 = arith.constant 0 : index
    %c0_4 = arith.constant 0 : index
    %4 = vector.load %arg3[%c0_3, %c0_4] : memref<1x144xf32, #tpu.memory_space<vmem>>, vector<1x144xf32>
    %5 = vector.broadcast %4 : vector<1x144xf32> to vector<8x144xf32>
    %6 = arith.addf %3, %5 : vector<8x144xf32>
    %cst_5 = arith.constant 0.000000e+00 : f32
    %7 = vector.broadcast %cst_5 : f32 to vector<8x144xf32>
    %8 = arith.maximumf %6, %7 : vector<8x144xf32>
    %9 = arith.truncf %8 : vector<8x144xf32> to vector<8x144xbf16>
    %c0_6 = arith.constant 0 : index
    %c0_7 = arith.constant 0 : index
    %10 = vector.load %arg4[%c0_6, %c0_7] : memref<144x144xbf16, #tpu.memory_space<vmem>>, vector<144x144xbf16>
    %cst_8 = arith.constant dense<0.000000e+00> : vector<8x144xf32>
    %11 = tpu.matmul %9, %10, %cst_8 {dimension_numbers = #tpu.dot_dimension_numbers<[1], [0], [0], [1], [0, 0, 1, 1], [], []>} : vector<8x144xbf16>, vector<144x144xbf16>, vector<8x144xf32> -> vector<8x144xf32>
    %c0_9 = arith.constant 0 : index
    %c0_10 = arith.constant 0 : index
    %12 = vector.load %arg5[%c0_9, %c0_10] : memref<1x144xf32, #tpu.memory_space<vmem>>, vector<1x144xf32>
    %13 = vector.broadcast %12 : vector<1x144xf32> to vector<8x144xf32>
    %14 = arith.addf %11, %13 : vector<8x144xf32>
    %cst_11 = arith.constant 0.000000e+00 : f32
    %15 = vector.broadcast %cst_11 : f32 to vector<8x144xf32>
    %16 = arith.maximumf %14, %15 : vector<8x144xf32>
    %17 = arith.truncf %16 : vector<8x144xf32> to vector<8x144xbf16>
    %c0_12 = arith.constant 0 : index
    %c0_13 = arith.constant 0 : index
    %18 = vector.load %arg6[%c0_12, %c0_13] : memref<144x144xbf16, #tpu.memory_space<vmem>>, vector<144x144xbf16>
    %cst_14 = arith.constant dense<0.000000e+00> : vector<8x144xf32>
    %19 = tpu.matmul %17, %18, %cst_14 {dimension_numbers = #tpu.dot_dimension_numbers<[1], [0], [0], [1], [0, 0, 1, 1], [], []>} : vector<8x144xbf16>, vector<144x144xbf16>, vector<8x144xf32> -> vector<8x144xf32>
    %c0_15 = arith.constant 0 : index
    %c0_16 = arith.constant 0 : index
    %20 = vector.load %arg7[%c0_15, %c0_16] : memref<1x144xf32, #tpu.memory_space<vmem>>, vector<1x144xf32>
    %21 = vector.broadcast %20 : vector<1x144xf32> to vector<8x144xf32>
    %22 = arith.addf %19, %21 : vector<8x144xf32>
    %cst_17 = arith.constant 0.000000e+00 : f32
    %23 = vector.broadcast %cst_17 : f32 to vector<8x144xf32>
    %24 = arith.maximumf %22, %23 : vector<8x144xf32>
    %25 = arith.truncf %24 : vector<8x144xf32> to vector<8x144xbf16>
    %c0_18 = arith.constant 0 : index
    %c0_19 = arith.constant 0 : index
    %26 = vector.load %arg8[%c0_18, %c0_19] : memref<144x8xbf16, #tpu.memory_space<vmem>>, vector<144x8xbf16>
    %cst_20 = arith.constant dense<0.000000e+00> : vector<8x8xf32>
    %27 = tpu.matmul %25, %26, %cst_20 {dimension_numbers = #tpu.dot_dimension_numbers<[1], [0], [0], [1], [0, 0, 1, 1], [], []>} : vector<8x144xbf16>, vector<144x8xbf16>, vector<8x8xf32> -> vector<8x8xf32>
    %c0_21 = arith.constant 0 : index
    %c0_22 = arith.constant 0 : index
    %28 = vector.load %arg9[%c0_21, %c0_22] : memref<1x8xf32, #tpu.memory_space<vmem>>, vector<1x8xf32>
    %29 = vector.broadcast %28 : vector<1x8xf32> to vector<8x8xf32>
    %30 = arith.addf %27, %29 : vector<8x8xf32>
    %c0_23 = arith.constant 0 : index
    %c0_24 = arith.constant 0 : index
    %31 = vector.load %arg10[%c0_23, %c0_24] : memref<8x8xf32, #tpu.memory_space<vmem>>, vector<8x8xf32>
    tpu.vector_store %arg10[%c0_23, %c0_24], %30 {strides = array<i32>} : memref<8x8xf32, #tpu.memory_space<vmem>>, vector<8x8xf32>,
    return
  }
  func.func @transform_0(%arg0: i32) -> (i32, i32) {
    %c0_i32 = arith.constant 0 : i32
    %c0_i32_0 = arith.constant 0 : i32
    return %arg0, %c0_i32 : i32, i32
  }
  func.func @transform_1(%arg0: i32) -> (i32, i32) {
    %c0_i32 = arith.constant 0 : i32
    %c0_i32_0 = arith.constant 0 : i32
    %c0_i32_1 = arith.constant 0 : i32
    return %c0_i32, %c0_i32_0 : i32, i32
  }
  func.func @transform_2(%arg0: i32) -> (i32, i32) {
    %c0_i32 = arith.constant 0 : i32
    %c0_i32_0 = arith.constant 0 : i32
    %c0_i32_1 = arith.constant 0 : i32
    return %c0_i32, %c0_i32_0 : i32, i32
  }
  func.func @transform_3(%arg0: i32) -> (i32, i32) {
    %c0_i32 = arith.constant 0 : i32
    %c0_i32_0 = arith.constant 0 : i32
    %c0_i32_1 = arith.constant 0 : i32
    return %c0_i32, %c0_i32_0 : i32, i32
  }
  func.func @transform_4(%arg0: i32) -> (i32, i32) {
    %c0_i32 = arith.constant 0 : i32
    %c0_i32_0 = arith.constant 0 : i32
    %c0_i32_1 = arith.constant 0 : i32
    return %c0_i32, %c0_i32_0 : i32, i32
  }
  func.func @transform_5(%arg0: i32) -> (i32, i32) {
    %c0_i32 = arith.constant 0 : i32
    %c0_i32_0 = arith.constant 0 : i32
    %c0_i32_1 = arith.constant 0 : i32
    return %c0_i32, %c0_i32_0 : i32, i32
  }
  func.func @transform_6(%arg0: i32) -> (i32, i32) {
    %c0_i32 = arith.constant 0 : i32
    %c0_i32_0 = arith.constant 0 : i32
    %c0_i32_1 = arith.constant 0 : i32
    return %c0_i32, %c0_i32_0 : i32, i32
  }
  func.func @transform_7(%arg0: i32) -> (i32, i32) {
    %c0_i32 = arith.constant 0 : i32
    %c0_i32_0 = arith.constant 0 : i32
    %c0_i32_1 = arith.constant 0 : i32
    return %c0_i32, %c0_i32_0 : i32, i32
  }
  func.func @transform_8(%arg0: i32) -> (i32, i32) {
    %c0_i32 = arith.constant 0 : i32
    %c0_i32_0 = arith.constant 0 : i32
    %c0_i32_1 = arith.constant 0 : i32
    return %c0_i32, %c0_i32_0 : i32, i32
  }
  func.func @transform_9(%arg0: i32) -> (i32, i32) {
    %c0_i32 = arith.constant 0 : i32
    %c0_i32_0 = arith.constant 0 : i32
    return %arg0, %c0_i32 : i32, i32
  }
}

</mosaic_0001>

<bundles_post_ra>
// kernel: tpu_custom_call.1
= control target key start
LH: loop header
LB: loop body
LE: loop exit
PB: predicated region body
PF: predicated region fallthrough
CT: control target
= control target key end

     0   :  { %14 = vsyncpa [#allocation3], 0  ;;  %s985_s0 = inlined_call_operand.vmem [shape: f32[2,12], index: 0, kind: input, shape index: {}]   ;;  %s986_s1 = inlined_call_operand.vmem [shape: bf16[12,144], index: 1, kind: input, shape index: {}]   ;;  %s987_s2 = inlined_call_operand.vmem [shape: f32[1,144], index: 2, kind: input, shape index: {}]   ;;  %s988_s3 = inlined_call_operand.hbm [shape: bf16[144,144], index: 3, kind: input, shape index: {}]   ;;  %s989_s4 = inlined_call_operand.vmem [shape: f32[1,144], index: 4, kind: input, shape index: {}]   ;;  %s990_s5 = inlined_call_operand.hbm [shape: bf16[144,144], index: 5, kind: input, shape index: {}]   ;;  %s991_s6 = inlined_call_operand.vmem [shape: f32[1,144], index: 6, kind: input, shape index: {}]   ;;  %s992_s7 = inlined_call_operand.vmem [shape: bf16[144,8], index: 7, kind: input, shape index: {}]   ;;  %s993_s8 = inlined_call_operand.vmem [shape: f32[1,8], index: 8, kind: input, shape index: {}]   ;;  %s994_s9 = inlined_call_operand.hbm [shape: f32[2,8], index: 9, kind: output, shape index: {}]  }
   0x1   :  { %15 = vsyncpa [#allocation6], 0 }
   0x2   :  { %16 = vsyncpa [#allocation4], 0  ;;  %s820_s30 = smov [#allocation2]   ;;  %s748_s13 = scalar_lea.hbm %s988_s3, 2304 }
   0x3   :  { %s28_s10 = sshll.u32 %s820_s30, 4  ;;  %p749_p0 = scmp.ne.s32.totalorder %s988_s3, %s748_s13  ;;  %s29_s10 = int_to_ptr.vmem [resolvable:$true] %s28_s10 }
   0x4   :  { %p752_p1 = scmp.lt.u32.totalorder %s748_s13, %s988_s3 }
   0x6   :  { %p754_p2 = pnand %p752_p1, %p749_p0 }
   0x8   :  { %757 = shalt.err (!%p754_p2)
}
   0x9   :  { %s758_s18 = scalar_lea.vmem %s29_s10, 2304  ;;  %p763_p4 = scmp.lt.s32.totalorder %s29_s10, %s29_s10 }
   0xa   :  { %p759_p3 = scmp.ne.s32.totalorder %s29_s10, %s758_s18  ;;  %p764_p5 = scmp.lt.s32.totalorder %s758_s18, %s758_s18 }
   0xc   :  { %p765_p6 = por %p764_p5, %p763_p4 }
   0xe   :  { %p766_p7 = pnand %p765_p6, %p759_p3 }
  0x10   :  { %769 = shalt.err (!%p766_p7)
}
  0x11   :  { %s821_s19 = smov 128   ;;  %s822_s20 = smov 8  }
  0x12   :  { %34 = dma.hbm_to_vmem [thread:$0]  %s988_s3, 2304, %s29_s10, [#allocation3], %s821_s19, %s821_s19, %s822_s20  }
  0x13   :  { %s823_s23 = smov [#allocation5]   ;;  %s770_s27 = scalar_lea.hbm %s990_s5, 2304 }
  0x14   :  { %s42_s24 = sshll.u32 %s823_s23, 4  ;;  %p771_p8 = scmp.ne.s32.totalorder %s990_s5, %s770_s27  ;;  %s43_s24 = int_to_ptr.vmem [resolvable:$true] %s42_s24 }
  0x15   :  { %p774_p9 = scmp.lt.u32.totalorder %s770_s27, %s990_s5 }
  0x17   :  { %p776_p10 = pnand %p774_p9, %p771_p8 }
  0x19   :  { %779 = shalt.err (!%p776_p10)
}
  0x1a   :  { %s780_s12 = scalar_lea.vmem %s43_s24, 2304  ;;  %p785_p12 = scmp.lt.s32.totalorder %s43_s24, %s43_s24 }
  0x1b   :  { %p781_p11 = scmp.ne.s32.totalorder %s43_s24, %s780_s12  ;;  %p786_p13 = scmp.lt.s32.totalorder %s780_s12, %s780_s12 }
  0x1d   :  { %p787_p0 = por %p786_p13, %p785_p12 }
  0x1f   :  { %p788_p1 = pnand %p787_p0, %p781_p11 }
  0x21   :  { %791 = shalt.err (!%p788_p1)
}
  0x22   :  { %48 = dma.hbm_to_vmem [thread:$0]  %s990_s5, 2304, %s43_s24, [#allocation6], %s821_s19, %s821_s19, %s822_s20  }
  0x23   :  { %814 = dma.done.wait [#allocation3], 2304  }
  0x24   :  { %815 = vsyncadd [#allocation3], 4294964992 }
  0x25   :  { %816 = dma.done.wait [#allocation6], 2304  }
  0x26   :  { %817 = vsyncadd [#allocation6], 4294964992  ;;  %v824_v0 = vmov 0   ;;  %vm90_vm0 = vcmask 1045504   ;;  %v62_v3 = vld [vmem:[%s985_s0] sm:$0xff]  ;;  %vm86_vm1 = vcmask 97280   ;;  %v68_v38 = vlaneseq }
  0x27   :  { %129 = vmatprep.mubr.bf16.mxu0 %v824_v0  ;;  %v682_v1 = vld [vmem:[%s986_s1 + $0x4] ss:$8 sps:$4 sm:$0x3f]   ;;  %v684_v2 = vld [vmem:[%s986_s1] ss:$8 sps:$4 sm:$0x3f]   ;;  %v63_v7 = vpack.c.bf16 %v62_v3, %v62_v3 }
  0x28   :  { %623 = vmatprep.subr.msk.bf16.mxu0 %vm90_vm0, %v682_v1  ;;  %v685_v4 = vld [vmem:[#allocation2 + $0x4] ss:$8 sps:$4 sm:$0xff]   ;;  %v687_v5 = vld [vmem:[#allocation2] ss:$8 sps:$4 sm:$0xff]   ;;  %v92_v6 = vsel %vm90_vm0, %v684_v2, 0  ;;  %v69_v39 = vshrl.u32 %v68_v38, 7 }
  0x29   :  { %v688_v8 = vld [vmem:[#allocation2 + $0x14] ss:$8 sps:$4 sm:$0xff]   ;;  %98 = vmatpush1.bf16.msra.mxu0 %v92_v6  ;;  %266 = vmatprep.subr.bf16.mxu1 %v685_v4  ;;  %v690_v9 = vld [vmem:[#allocation2 + $0x10] ss:$8 sps:$4 sm:$0xff]   ;;  %v691_v10 = vld [vmem:[#allocation2 + $0x24] ss:$8 sps:$4 sm:$0xff]  }
  0x2a   :  { %267 = vmatpush1.bf16.msra.mxu1 %v687_v5  ;;  %v693_v11 = vld [vmem:[#allocation2 + $0x20] ss:$8 sps:$4 sm:$0xff]   ;;  %v694_v12 = vld [vmem:[#allocation2 + $0x34] ss:$8 sps:$4 sm:$0xff]   ;;  %v696_v13 = vld [vmem:[#allocation2 + $0x30] ss:$8 sps:$4 sm:$0xff]  }
  0x2b   :  { %268 = vmatprep.subr.bf16.mxu1 %v688_v8  ;;  %v697_v14 = vld [vmem:[#allocation2 + $0x44] ss:$8 sps:$4 sm:$0xff]   ;;  %v699_v15 = vld [vmem:[#allocation2 + $0x40] ss:$8 sps:$4 sm:$0xff]   ;;  %v700_v16 = vld [vmem:[#allocation2 + $0x54] ss:$8 sps:$4 sm:$0xff]  }
  0x2c   :  { %624 = vmatmul.mubr.msk.bf16.vlgmr.msra.gmra.mrb[0].mxu0 %vm86_vm1, %v63_v7  ;;  %v702_v17 = vld [vmem:[#allocation2 + $0x50] ss:$8 sps:$4 sm:$0xff]   ;;  %v703_v18 = vld [vmem:[#allocation2 + $0x64] ss:$8 sps:$4 sm:$0xff]   ;;  %v705_v19 = vld [vmem:[#allocation2 + $0x60] ss:$8 sps:$4 sm:$0xff]  }
  0x2d   :  { %v706_v20 = vld [vmem:[#allocation2 + $0x74] ss:$8 sps:$4 sm:$0xff]   ;;  %v708_v21 = vld [vmem:[#allocation2 + $0x70] ss:$8 sps:$4 sm:$0xff]   ;;  %v709_v22 = vld [vmem:[#allocation2 + $0x84] ss:$8 sps:$4 sm:$0xff]  }
  0x2e   :  { %269 = vmatpush1.bf16.msra.mxu1 %v690_v9  ;;  %v711_v23 = vld [vmem:[#allocation2 + $0x80] ss:$8 sps:$4 sm:$0xff]   ;;  %v712_v24 = vld [vmem:[#allocation5] ss:$8 sps:$4 sm:$0xff]   ;;  %v714_v25 = vld [vmem:[#allocation5 + $0x4] ss:$8 sps:$4 sm:$0xff]  }
  0x2f   :  { %270 = vmatprep.subr.bf16.mxu1 %v691_v10  ;;  %v717_v26 = vld [vmem:[#allocation5 + $0x14] ss:$8 sps:$4 sm:$0xff]   ;;  %434 = vmatprep.subr.bf16.mxu0 %v714_v25  ;;  %v715_v27 = vld [vmem:[#allocation5 + $0x10] ss:$8 sps:$4 sm:$0xff]   ;;  %v720_v28 = vld [vmem:[#allocation5 + $0x24] ss:$8 sps:$4 sm:$0xff]  }
  0x30   :  { %435 = vmatpush1.bf16.msra.mxu0 %v712_v24  ;;  %v718_v29 = vld [vmem:[#allocation5 + $0x20] ss:$8 sps:$4 sm:$0xff]   ;;  %v723_v30 = vld [vmem:[#allocation5 + $0x34] ss:$8 sps:$4 sm:$0xff]   ;;  %v721_v31 = vld [vmem:[#allocation5 + $0x30] ss:$8 sps:$4 sm:$0xff]  }
  0x31   :  { %436 = vmatprep.subr.bf16.mxu0 %v717_v26  ;;  %v726_v32 = vld [vmem:[#allocation5 + $0x44] ss:$8 sps:$4 sm:$0xff]   ;;  %v724_v33 = vld [vmem:[#allocation5 + $0x40] ss:$8 sps:$4 sm:$0xff]   ;;  %v729_v34 = vld [vmem:[#allocation5 + $0x54] ss:$8 sps:$4 sm:$0xff]  }
  0x32   :  { %271 = vmatpush1.bf16.msra.mxu1 %v693_v11  ;;  %v727_v35 = vld [vmem:[#allocation5 + $0x50] ss:$8 sps:$4 sm:$0xff]   ;;  %v732_v36 = vld [vmem:[#allocation5 + $0x64] ss:$8 sps:$4 sm:$0xff]   ;;  %v730_v37 = vld [vmem:[#allocation5 + $0x60] ss:$8 sps:$4 sm:$0xff]  }
  0x33   :  { %272 = vmatprep.subr.bf16.mxu1 %v694_v12  ;;  %v913_v40 = vsub.s32 0, %v69_v39  ;;  %v66_v41 = vld [vmem:[%s987_s2] sm:$0x3]  ;;  %v918_v42 = vsub.s32 1, %v69_v39  ;;  %vm262_vm2 = vcmask 130048   ;;  %v740_v60 = vld [vmem:[%s992_s7 + $0x8] sm:$0xff]  }
  0x34   :  { %437 = vmatpush1.bf16.msra.mxu0 %v715_v27  ;;  %v735_v55 = vld [vmem:[#allocation5 + $0x74] ss:$8 sps:$4 sm:$0xff]   ;;  %v733_v56 = vld [vmem:[#allocation5 + $0x70] ss:$8 sps:$4 sm:$0xff]   ;;  %v738_v57 = vld [vmem:[#allocation5 + $0x84] ss:$8 sps:$4 sm:$0xff]  }
  0x35   :  { %438 = vmatprep.subr.bf16.mxu0 %v720_v28  ;;  %v71_v43 = vrot.slane %v66_v41, %v913_v40  ;;  %v75_v44 = vrot.slane %v66_v41, %v918_v42  ;;  %v736_v58 = vld [vmem:[#allocation5 + $0x80] ss:$8 sps:$4 sm:$0xff]   ;;  %v739_v59 = vld [vmem:[%s992_s7] sm:$0xff]   ;;  %v744_v1 = vld [vmem:[%s992_s7 + $0x28] sm:$0xff]   ;;  %vm601_vm3 = vcmask 64512  }
  0x36   :  { %273 = vmatpush1.bf16.msra.mxu1 %v696_v13  ;;  %v741_v61 = vld [vmem:[%s992_s7 + $0x10] sm:$0xff]   ;;  %v742_v62 = vld [vmem:[%s992_s7 + $0x18] sm:$0xff]   ;;  %v743_v63 = vld [vmem:[%s992_s7 + $0x20] sm:$0xff]  }
  0x37   :  { %274 = vmatprep.subr.bf16.mxu1 %v697_v14  ;;  %v745_v2 = vld [vmem:[%s992_s7 + $0x30] sm:$0xff]   ;;  %v160_v3 = vld [vmem:[%s989_s4] sm:$0x3] }
  0x38   :  { %439 = vmatpush1.bf16.msra.mxu0 %v718_v29  ;;  %v165_v4 = vrot.slane %v160_v3, %v913_v40  ;;  %v169_v5 = vrot.slane %v160_v3, %v918_v42 }
  0x39   :  { %440 = vmatprep.subr.bf16.mxu0 %v723_v30  ;;  %v663_v30 = vld [vmem:[%s993_s8] ss:$0 sm:$0xff] }
  0x3a   :  { %275 = vmatpush1.bf16.msra.mxu1 %v699_v15 }
  0x3b   :  { %276 = vmatprep.subr.bf16.mxu1 %v700_v16  ;;  %v746_v16 = vld [vmem:[%s992_s7 + $0x38] sm:$0xff]  }
  0x3c   :  { %441 = vmatpush1.bf16.msra.mxu0 %v721_v31 }
  0x3d   :  { %442 = vmatprep.subr.bf16.mxu0 %v726_v32 }
  0x3e   :  { %277 = vmatpush1.bf16.msra.mxu1 %v702_v17  ;;  %v747_v17 = vld [vmem:[%s992_s7 + $0x40] sm:$0xff]  }
  0x3f   :  { %278 = vmatprep.subr.bf16.mxu1 %v703_v18  ;;  %v329_v18 = vld [vmem:[%s991_s6] sm:$0x3] }
  0x40   :  { %443 = vmatpush1.bf16.msra.mxu0 %v724_v33 }
  0x41   :  { %444 = vmatprep.subr.bf16.mxu0 %v729_v34 }
  0x42   :  { %279 = vmatpush1.bf16.msra.mxu1 %v705_v19  ;;  %v334_v19 = vrot.slane %v329_v18, %v913_v40 }
  0x43   :  { %280 = vmatprep.subr.bf16.mxu1 %v706_v20  ;;  %v338_v20 = vrot.slane %v329_v18, %v918_v42 }
  0x44   :  { %445 = vmatpush1.bf16.msra.mxu0 %v727_v35 }
  0x45   :  { %446 = vmatprep.subr.bf16.mxu0 %v732_v36 }
  0x46   :  { %281 = vmatpush1.bf16.msra.mxu1 %v708_v21 }
  0x47   :  { %282 = vmatprep.subr.bf16.mxu1 %v709_v22 }
  0x48   :  { %447 = vmatpush1.bf16.msra.mxu0 %v730_v37 }
  0x49   :  { %448 = vmatprep.subr.bf16.mxu0 %v735_v55 }
  0x4a   :  { %283 = vmatpush1.bf16.msra.mxu1 %v711_v23 }
  0x4b   :  { %561 = vmatprep.subr.bf16.mxu1 %v824_v0 }
  0x4c   :  { %449 = vmatpush1.bf16.msra.mxu0 %v733_v56 }
  0x4d   :  { %450 = vmatprep.subr.bf16.mxu0 %v738_v57 }
  0x50   :  { %451 = vmatpush1.bf16.msra.mxu0 %v736_v58 }
  0xff   :  { %v131_v45 = vpop.f32.mrb[0].mxu0 }
 0x100   :  { %v132_v46 = vadd.f32 %v131_v45, %v71_v43  ;;  %v133_v47 = vpop.f32.mrb[1].mxu0 }
 0x101   :  { %v134_v48 = vadd.f32 %v133_v47, %v75_v44  ;;  %v135_v49 = vpop.f32.mrb[2].mxu0 }
 0x102   :  { %v138_v50 = vmax.f32 %v132_v46, 0.0  ;;  %v136_v51 = vpop.f32.mrb[3].mxu0 }
 0x103   :  { %v139_v52 = vmax.f32 %v134_v48, 0.0 }
 0x104   :  { %v140_v54 = vpack.c.bf16 %v138_v50, %v138_v50 }
 0x105   :  { %v141_v53 = vpack.c.bf16 %v139_v52, %v139_v52 }
 0x107   :  { %643 = vmatprep.mubr.msk.bf16.mxu1 %vm262_vm2, %v141_v53 }
 0x108   :  { %299 = vmatmul.mubr.bf16.vlgmr.msra.gmra.mrb[0].mxu1 %v140_v54 }
 0x109   :  { %562 = vmatpush1.bf16.msra.mxu1 %v739_v59 }
 0x10a   :  { %563 = vmatprep.subr.bf16.mxu1 %v824_v0 }
 0x10d   :  { %564 = vmatpush1.bf16.msra.mxu1 %v740_v60 }
 0x10e   :  { %565 = vmatprep.subr.bf16.mxu1 %v824_v0 }
 0x111   :  { %566 = vmatpush1.bf16.msra.mxu1 %v741_v61 }
 0x112   :  { %567 = vmatprep.subr.bf16.mxu1 %v824_v0 }
 0x115   :  { %568 = vmatpush1.bf16.msra.mxu1 %v742_v62 }
 0x116   :  { %569 = vmatprep.subr.bf16.mxu1 %v824_v0 }
 0x119   :  { %570 = vmatpush1.bf16.msra.mxu1 %v743_v63 }
 0x11a   :  { %571 = vmatprep.subr.bf16.mxu1 %v824_v0 }
 0x11d   :  { %572 = vmatpush1.bf16.msra.mxu1 %v744_v1 }
 0x11e   :  { %573 = vmatprep.subr.bf16.mxu1 %v824_v0 }
 0x121   :  { %574 = vmatpush1.bf16.msra.mxu1 %v745_v2 }
 0x122   :  { %575 = vmatprep.subr.bf16.mxu1 %v824_v0 }
 0x125   :  { %576 = vmatpush1.bf16.msra.mxu1 %v746_v16 }
 0x126   :  { %577 = vmatprep.subr.bf16.mxu1 %v824_v0 }
 0x129   :  { %578 = vmatpush1.bf16.msra.mxu1 %v747_v17 }
 0x1db   :  { %v300_v6 = vpop.f32.mrb[0].mxu1 }
 0x1dc   :  { %v301_v7 = vadd.f32 %v300_v6, %v165_v4  ;;  %v302_v8 = vpop.f32.mrb[1].mxu1 }
 0x1dd   :  { %v303_v9 = vadd.f32 %v302_v8, %v169_v5  ;;  %v304_v10 = vpop.f32.mrb[2].mxu1 }
 0x1de   :  { %v307_v11 = vmax.f32 %v301_v7, 0.0  ;;  %v305_v12 = vpop.f32.mrb[3].mxu1 }
 0x1df   :  { %v308_v13 = vmax.f32 %v303_v9, 0.0 }
 0x1e0   :  { %v309_v15 = vpack.c.bf16 %v307_v11, %v307_v11 }
 0x1e1   :  { %v310_v14 = vpack.c.bf16 %v308_v13, %v308_v13 }
 0x1e3   :  { %662 = vmatprep.mubr.msk.bf16.mxu0 %vm262_vm2, %v310_v14 }
 0x1e4   :  { %467 = vmatmul.mubr.bf16.vlgmr.msra.gmra.mrb[4].mxu0 %v309_v15 }
 0x2b7   :  { %v468_v21 = vpop.f32.mrb[4].mxu0 }
 0x2b8   :  { %v469_v22 = vadd.f32 %v468_v21, %v334_v19  ;;  %v470_v23 = vpop.f32.mrb[5].mxu0 }
 0x2b9   :  { %v471_v24 = vadd.f32 %v470_v23, %v338_v20  ;;  %v472_v25 = vpop.f32.mrb[6].mxu0 }
 0x2ba   :  { %v475_v26 = vmax.f32 %v469_v22, 0.0  ;;  %v473_v0 = vpop.f32.mrb[7].mxu0 }
 0x2bb   :  { %v476_v27 = vmax.f32 %v471_v24, 0.0 }
 0x2bc   :  { %v477_v29 = vpack.c.bf16 %v475_v26, %v475_v26 }
 0x2bd   :  { %v478_v28 = vpack.c.bf16 %v476_v27, %v476_v27 }
 0x2bf   :  { %673 = vmatprep.mubr.msk.bf16.mxu1 %vm262_vm2, %v478_v28 }
 0x2c0   :  { %594 = vmatmul.mubr.bf16.vlgmr.msra.gmra.mrb[4].mxu1 %v477_v29 }
 0x393   :  { %v595_v31 = vpop.f32.mrb[4].mxu1 }
 0x394   :  { %v596_v32 = vadd.f32 %v663_v30, %v595_v31  ;;  %v597_v33 = vpop.f32.mrb[5].mxu1 }
 0x395   :  { %v598_v34 = vpop.f32.mrb[6].mxu1 }
 0x396   :  { %602 = vst.msk [vmem:[#allocation7] sm:$0xff] %vm601_vm3, %v596_v32  ;;  %v599_v35 = vpop.f32.mrb[7].mxu1 }
 0x397   :  { %607 = vsyncadd [#allocation4], 96  ;;  %s825_s6 = smov [#allocation7]  }
 0x398   :  { %s608_s17 = sshll.u32 %s825_s6, 4  ;;  %s609_s17 = int_to_ptr.vmem [resolvable:$true] %s608_s17 }
 0x399   :  { %s792_s18 = scalar_lea.vmem %s609_s17, 32  ;;  %s796_s0 = scalar_lea.vmem %s609_s17, 128 }
 0x39a   :  { %p793_p2 = scmp.ne.s32.totalorder %s609_s17, %s792_s18  ;;  %p797_p3 = scmp.lt.s32.totalorder %s609_s17, %s609_s17 }
 0x39b   :  { %p798_p4 = scmp.lt.s32.totalorder %s796_s0, %s792_s18 }
 0x39d   :  { %p799_p5 = por %p798_p4, %p797_p3 }
 0x39f   :  { %p800_p6 = pnand %p799_p5, %p793_p2 }
 0x3a1   :  { %803 = shalt.err (!%p800_p6)
}
 0x3a2   :  { %s804_s2 = scalar_lea.hbm %s994_s9, 32 }
 0x3a3   :  { %p805_p7 = scmp.ne.s32.totalorder %s994_s9, %s804_s2  ;;  %p808_p8 = scmp.lt.u32.totalorder %s804_s2, %s994_s9 }
 0x3a5   :  { %p810_p9 = pnand %p808_p8, %p805_p7 }
 0x3a7   :  { %813 = shalt.err (!%p810_p9)
}
 0x3a8   :  { %s826_s22 = smov 32   ;;  %s827_s23 = smov 2  }
 0x3a9   :  { %614 = dma.vmem_to_hbm [thread:$0]  %s609_s17, 32, %s994_s9, [#allocation4], %s826_s22, %s826_s22, %s827_s23  }
 0x3aa   :  { %818 = dma.done.wait [#allocation4], 128  }
 0x3ab   :  { %819 = vsyncadd [#allocation4], 4294967168 }
 0x3ac   :  { %618 = vsyncpa [#allocation3], 1 }
 0x3ad   :  { %619 = vsyncpa [#allocation6], 1 }
 0x3ae   :  { %620 = vsyncpa [#allocation4], 1 }

</bundles_post_ra>
